<compile_context>
chip_gen: v5e
topology: v5e:2x2
jax: 0.10.0
libtpu: 0.0.40
codegen_flags: <defaults>
</compile_context>

<pallas_src>
import functools
import math

import jax
import jax.numpy as jnp
from jax import lax
from jax.experimental import pallas as pl
from jax.experimental.pallas import tpu as pltpu


def _block_kernel(*refs, eps, has_proj, valid_feats, padded_feats):
    if has_proj:
        (x_ref, wp_ref, bp_ref, g_ref, bt_ref,
         w1_ref, b1_ref, w2_ref, b2_ref, o_ref) = refs
    else:
        (x_ref, g_ref, bt_ref,
         w1_ref, b1_ref, w2_ref, b2_ref, o_ref) = refs

    # ---- optional projection (dim != dim_out) -------------------------------
    x = x_ref[...]
    if has_proj:
        wp = wp_ref[...]
        if x.dtype != wp.dtype:                 # feed MXU in the weight's storage dtype
            x = x.astype(wp.dtype)
        xp = jnp.dot(x, wp, preferred_element_type=jnp.float32)
        xp = xp + bp_ref[...].astype(jnp.float32)
    else:
        xp = x.astype(jnp.float32)

    # Stash residual x' into the (VMEM-resident) output block right away so it
    # does not stay live across the MLP matmuls.
    o_ref[...] = xp.astype(o_ref.dtype)

    # ---- LayerNorm (norm2) over the *valid* feature lanes -------------------
    # Padded lanes of x' are exact zeros (zero-padded proj columns / bias), so the
    # sum is unaffected; the (x - mu) term is masked before the variance.
    inv_n = 1.0 / float(valid_feats)
    mu = jnp.sum(xp, axis=-1, keepdims=True) * inv_n
    d = xp - mu
    if padded_feats:
        lane = lax.broadcasted_iota(jnp.int32, d.shape, 1)
        d = jnp.where(lane < valid_feats, d, 0.0)
    var = jnp.sum(d * d, axis=-1, keepdims=True) * inv_n
    xn = d * lax.rsqrt(var + eps)
    xn = xn * g_ref[...].astype(jnp.float32) + bt_ref[...].astype(jnp.float32)

    # ---- Mlp: fc1 -> exact (erf) GELU -> fc2  (dropout p=0 at defaults) -----
    w1 = w1_ref[...]
    a1 = xn.astype(w1.dtype) if w1.dtype != jnp.float32 else xn
    h = jnp.dot(a1, w1, preferred_element_type=jnp.float32)
    h = h + b1_ref[...].astype(jnp.float32)
    h = 0.5 * h * (1.0 + lax.erf(h * 0.7071067811865476))   # nn.GELU() (erf form)

    w2 = w2_ref[...]
    a2 = h.astype(w2.dtype) if w2.dtype != jnp.float32 else h
    y = jnp.dot(a2, w2, preferred_element_type=jnp.float32)
    y = y + b2_ref[...].astype(jnp.float32)

    # ---- residual (drop_path = Identity) ------------------------------------
    o_ref[...] = (o_ref[...].astype(jnp.float32) + y).astype(o_ref.dtype)


def _round_up(v, m):
    return (v + m - 1) // m * m


def _pad2d(a, rows, cols):
    pr, pc = rows - a.shape[0], cols - a.shape[1]
    return jnp.pad(a, ((0, pr), (0, pc))) if (pr or pc) else a


def _pad_row(a, cols):
    a = a.reshape(1, -1)
    pc = cols - a.shape[1]
    return jnp.pad(a, ((0, 0), (0, pc))) if pc else a


def _vmem_capacity_bytes():
    try:
        info = pltpu.get_tpu_info()
        cap = getattr(info, "vmem_capacity_bytes", None)
        if cap:
            return int(cap)
    except Exception:
        pass
    return 128 * 1024 * 1024


def identity_block_forward(x, gamma, beta, w1, b1, w2, b2,
                           proj_w=None, proj_b=None, *, eps=1e-5):
    """y = x' + fc2(gelu(fc1(layernorm(x')))); x' = x @ proj_w + proj_b if proj given."""
    orig_shape = x.shape
    dim = orig_shape[-1]
    n = math.prod(orig_shape[:-1])
    has_proj = proj_w is not None
    dim_out = proj_w.shape[1] if has_proj else dim
    hidden = w1.shape[1]
    out_dtype = x.dtype

    # Lane-dense feature/hidden padding (weights only; the activation tensor is
    # never padded).  Zero-padded columns/rows are numerically inert and the
    # padded output lanes are exact zeros, sliced off below.
    dp = _round_up(dim_out, 128) if has_proj else dim_out
    hp = _round_up(hidden, 128)

    if has_proj:
        wp = _pad2d(proj_w, dim, dp)
        bp = _pad_row(proj_b, dp)
    g = _pad_row(gamma, dp)
    bt = _pad_row(beta, dp)
    w1p = _pad2d(w1, dp, hp)
    b1p = _pad_row(b1, hp)
    w2p = _pad2d(w2, hp, dp)
    b2p = _pad_row(b2, dp)

    params = ([wp, bp] if has_proj else []) + [g, bt, w1p, b1p, w2p, b2p]
    weight_bytes = sum(int(p.size) * p.dtype.itemsize for p in params)

    x2 = x.reshape(n, dim)

    cap = _vmem_capacity_bytes()
    vmem_limit = max(32 << 20, min(int(cap * 0.78), cap - (8 << 20)))

    # TODO(synk): for very large MLPs whose w1/w2 alone exceed the v7x VMEM budget,
    # add a second "arbitrary" grid axis over the hidden dimension and accumulate
    # fc2 partial sums in VMEM scratch instead of keeping the weights fully resident.

    def run(single_buffer_consts):
        wb = weight_bytes * (1 if single_buffer_consts else 2)
        budget = vmem_limit - wb - (2 << 20)          # headroom for internal scratch
        tm = 8
        for cand in (1024, 512, 256, 128, 64, 32, 16, 8):
            per_block = (2 * cand * dim * x.dtype.itemsize          # input (dbl-buffered)
                         + 2 * cand * dp * jnp.dtype(out_dtype).itemsize  # output
                         + cand * (3 * dp + hp) * 4)                # f32 temporaries
            if per_block <= budget:
                tm = cand
                break
        if n <= tm:
            tm = n                                     # single full-extent block
        grid = (pl.cdiv(n, tm),)                       # ragged tail handled by Pallas

        cmode = {"pipeline_mode": pl.Buffered(1)} if single_buffer_consts else {}

        def cs(r, c):                                  # constant (weight) block spec
            return pl.BlockSpec((r, c), lambda i: (0, 0), **cmode)

        in_specs = [pl.BlockSpec((tm, dim), lambda i: (i, 0))]
        inputs = [x2]
        if has_proj:
            in_specs += [cs(dim, dp), cs(1, dp)]
            inputs += [wp, bp]
        in_specs += [cs(1, dp), cs(1, dp), cs(dp, hp), cs(1, hp), cs(hp, dp), cs(1, dp)]
        inputs += [g, bt, w1p, b1p, w2p, b2p]

        return pl.pallas_call(
            functools.partial(_block_kernel, eps=eps, has_proj=has_proj,
                              valid_feats=dim_out, padded_feats=(dp != dim_out)),
            out_shape=jax.ShapeDtypeStruct((n, dp), out_dtype),
            grid_spec=pltpu.PrefetchScalarGridSpec(
                num_scalar_prefetch=0,
                grid=grid,
                in_specs=in_specs,
                out_specs=pl.BlockSpec((tm, dp), lambda i: (i, 0)),
            ),
            compiler_params=pltpu.CompilerParams(
                dimension_semantics=("parallel",),
                vmem_limit_bytes=vmem_limit,
            ),
        )(*inputs)

    try:
        out = jax.block_until_ready(run(single_buffer_consts=True))
    except Exception:
        # Fallback if the lowering rejects buffer_count=1 for resident constants:
        # default double buffering (only costs extra VMEM for the weights).
        out = run(single_buffer_consts=False)

    if dp != dim_out:
        out = out[:, :dim_out]
    return out.reshape(*orig_shape[:-1], dim_out)


if __name__ == "__main__":
    key = jax.random.PRNGKey(0)
    ks = jax.random.split(key, 12)
    B, S = 2, 8

    # ---- Test 1: dim != dim_out -> exercises the projection (lane-padded) path.
    dim, dim_out = 16, 32
    hidden = int(dim_out * 4.0)
    x = jax.random.normal(ks[0], (B, S, dim), dtype=jnp.float32)
    proj_w = 0.1 * jax.random.normal(ks[1], (dim, dim_out), dtype=jnp.float32)
    proj_b = 0.1 * jax.random.normal(ks[2], (dim_out,), dtype=jnp.float32)
    gamma = jnp.ones((dim_out,), dtype=jnp.float32)
    beta = jnp.zeros((dim_out,), dtype=jnp.float32)
    w1 = 0.1 * jax.random.normal(ks[3], (dim_out, hidden), dtype=jnp.float32)
    b1 = 0.1 * jax.random.normal(ks[4], (hidden,), dtype=jnp.float32)
    w2 = 0.1 * jax.random.normal(ks[5], (hidden, dim_out), dtype=jnp.float32)
    b2 = 0.1 * jax.random.normal(ks[6], (dim_out,), dtype=jnp.float32)

    y = jax.block_until_ready(
        identity_block_forward(x, gamma, beta, w1, b1, w2, b2, proj_w, proj_b))

    def ref1(xx):
        h = xx @ proj_w + proj_b
        mu = jnp.mean(h, axis=-1, keepdims=True)
        var = jnp.mean((h - mu) ** 2, axis=-1, keepdims=True)
        hn = (h - mu) / jnp.sqrt(var + 1e-5) * gamma + beta
        return h + jax.nn.gelu(hn @ w1 + b1, approximate=False) @ w2 + b2

    y_ref = ref1(x)
    assert y.shape == (B, S, dim_out) and y.dtype == x.dtype
    assert jnp.allclose(y, y_ref, atol=1e-2, rtol=1e-2), float(jnp.max(jnp.abs(y - y_ref)))

    # ---- Test 2: dim == dim_out -> no projection (identity shortcut) path.
    d2 = 32
    h2 = int(d2 * 4.0)
    x2_in = jax.random.normal(ks[7], (B, S, d2), dtype=jnp.float32)
    g2 = jnp.ones((d2,), dtype=jnp.float32)
    bt2 = jnp.zeros((d2,), dtype=jnp.float32)
    w1b = 0.1 * jax.random.normal(ks[8], (d2, h2), dtype=jnp.float32)
    b1b = 0.1 * jax.random.normal(ks[9], (h2,), dtype=jnp.float32)
    w2b = 0.1 * jax.random.normal(ks[10], (h2, d2), dtype=jnp.float32)
    b2b = 0.1 * jax.random.normal(ks[11], (d2,), dtype=jnp.float32)

    y2 = jax.block_until_ready(
        identity_block_forward(x2_in, g2, bt2, w1b, b1b, w2b, b2b))

    def ref2(xx):
        mu = jnp.mean(xx, axis=-1, keepdims=True)
        var = jnp.mean((xx - mu) ** 2, axis=-1, keepdims=True)
        hn = (xx - mu) / jnp.sqrt(var + 1e-5) * g2 + bt2
        return xx + jax.nn.gelu(hn @ w1b + b1b, approximate=False) @ w2b + b2b

    y2_ref = ref2(x2_in)
    assert y2.shape == (B, S, d2) and y2.dtype == x2_in.dtype
    assert jnp.allclose(y2, y2_ref, atol=1e-2, rtol=1e-2), float(jnp.max(jnp.abs(y2 - y2_ref)))

    print("KERNEL_OK")
</pallas_src>

<mosaic_0001>
module attributes {stable_mosaic.version = 11 : i64} {
  func.func @_block_kernel(%arg0: i32, %arg1: memref<16x16xf32, #tpu.memory_space<vmem>>, %arg2: memref<16x128xf32, #tpu.memory_space<vmem>>, %arg3: memref<1x128xf32, #tpu.memory_space<vmem>>, %arg4: memref<1x128xf32, #tpu.memory_space<vmem>>, %arg5: memref<1x128xf32, #tpu.memory_space<vmem>>, %arg6: memref<128x128xf32, #tpu.memory_space<vmem>>, %arg7: memref<1x128xf32, #tpu.memory_space<vmem>>, %arg8: memref<128x128xf32, #tpu.memory_space<vmem>>, %arg9: memref<1x128xf32, #tpu.memory_space<vmem>>, %arg10: memref<16x128xf32, #tpu.memory_space<vmem>>) attributes {dimension_semantics = [#tpu.dimension_semantics<parallel>], iteration_bounds = array<i64: 1>, scalar_prefetch = 0 : i64, scratch_operands = 0 : i64, tpu.core_type = #tpu.core_type<tc>, window_params = [{transform_indices = @transform_0, window_bounds = array<i64: 16, 16>}, {pipeline_mode = #tpu.pipeline_mode<synchronous>, transform_indices = @transform_1, window_bounds = array<i64: 16, 128>}, {pipeline_mode = #tpu.pipeline_mode<synchronous>, transform_indices = @transform_2, window_bounds = array<i64: 1, 128>}, {pipeline_mode = #tpu.pipeline_mode<synchronous>, transform_indices = @transform_3, window_bounds = array<i64: 1, 128>}, {pipeline_mode = #tpu.pipeline_mode<synchronous>, transform_indices = @transform_4, window_bounds = array<i64: 1, 128>}, {pipeline_mode = #tpu.pipeline_mode<synchronous>, transform_indices = @transform_5, window_bounds = array<i64: 128, 128>}, {pipeline_mode = #tpu.pipeline_mode<synchronous>, transform_indices = @transform_6, window_bounds = array<i64: 1, 128>}, {pipeline_mode = #tpu.pipeline_mode<synchronous>, transform_indices = @transform_7, window_bounds = array<i64: 128, 128>}, {pipeline_mode = #tpu.pipeline_mode<synchronous>, transform_indices = @transform_8, window_bounds = array<i64: 1, 128>}, {transform_indices = @transform_9, window_bounds = array<i64: 16, 128>}]} {
    %c0 = arith.constant 0 : index
    %c0_0 = arith.constant 0 : index
    %0 = vector.load %arg1[%c0, %c0_0] : memref<16x16xf32, #tpu.memory_space<vmem>>, vector<16x16xf32>
    %c0_1 = arith.constant 0 : index
    %c0_2 = arith.constant 0 : index
    %1 = vector.load %arg2[%c0_1, %c0_2] : memref<16x128xf32, #tpu.memory_space<vmem>>, vector<16x128xf32>
    %cst = arith.constant dense<0.000000e+00> : vector<16x128xf32>
    %2 = tpu.matmul %0, %1, %cst {dimension_numbers = #tpu.dot_dimension_numbers<[1], [0], [0], [1], [0, 0, 1, 1], [], []>} : vector<16x16xf32>, vector<16x128xf32>, vector<16x128xf32> -> vector<16x128xf32>
    %c0_3 = arith.constant 0 : index
    %c0_4 = arith.constant 0 : index
    %3 = vector.load %arg3[%c0_3, %c0_4] : memref<1x128xf32, #tpu.memory_space<vmem>>, vector<1x128xf32>
    %4 = vector.broadcast %3 : vector<1x128xf32> to vector<16x128xf32>
    %5 = arith.addf %2, %4 : vector<16x128xf32>
    %c0_5 = arith.constant 0 : index
    %c0_6 = arith.constant 0 : index
    %6 = vector.load %arg10[%c0_5, %c0_6] : memref<16x128xf32, #tpu.memory_space<vmem>>, vector<16x128xf32>
    tpu.vector_store %arg10[%c0_5, %c0_6], %5 {strides = array<i32>} : memref<16x128xf32, #tpu.memory_space<vmem>>, vector<16x128xf32>,
    %cst_7 = arith.constant dense<0.000000e+00> : vector<16xf32>
    %7 = vector.multi_reduction <add>, %5, %cst_7 [1] : vector<16x128xf32> to vector<16xf32>
    %8 = vector.shape_cast %7 : vector<16xf32> to vector<16x1xf32>
    %cst_8 = arith.constant 3.125000e-02 : f32
    %9 = vector.broadcast %cst_8 : f32 to vector<16x1xf32>
    %10 = arith.mulf %8, %9 : vector<16x1xf32>
    %11 = vector.broadcast %10 : vector<16x1xf32> to vector<16x128xf32>
    %12 = arith.subf %5, %11 : vector<16x128xf32>
    %13 = tpu.iota {dimensions = array<i32: 1>} : vector<16x128xi32>
    %c32_i32 = arith.constant 32 : i32
    %14 = vector.broadcast %c32_i32 : i32 to vector<16x128xi32>
    %15 = arith.cmpi slt, %13, %14 : vector<16x128xi32>
    %cst_9 = arith.constant 0.000000e+00 : f32
    %16 = vector.broadcast %cst_9 : f32 to vector<16x128xf32>
    %17 = arith.select %15, %12, %16 : vector<16x128xi1>, vector<16x128xf32>
    %18 = arith.mulf %17, %17 : vector<16x128xf32>
    %cst_10 = arith.constant dense<0.000000e+00> : vector<16xf32>
    %19 = vector.multi_reduction <add>, %18, %cst_10 [1] : vector<16x128xf32> to vector<16xf32>
    %20 = vector.shape_cast %19 : vector<16xf32> to vector<16x1xf32>
    %cst_11 = arith.constant 3.125000e-02 : f32
    %21 = vector.broadcast %cst_11 : f32 to vector<16x1xf32>
    %22 = arith.mulf %20, %21 : vector<16x1xf32>
    %cst_12 = arith.constant 9.99999974E-6 : f32
    %23 = vector.broadcast %cst_12 : f32 to vector<16x1xf32>
    %24 = arith.addf %22, %23 : vector<16x1xf32>
    %25 = math.rsqrt %24 : vector<16x1xf32>
    %26 = vector.broadcast %25 : vector<16x1xf32> to vector<16x128xf32>
    %27 = arith.mulf %17, %26 : vector<16x128xf32>
    %c0_13 = arith.constant 0 : index
    %c0_14 = arith.constant 0 : index
    %28 = vector.load %arg4[%c0_13, %c0_14] : memref<1x128xf32, #tpu.memory_space<vmem>>, vector<1x128xf32>
    %29 = vector.broadcast %28 : vector<1x128xf32> to vector<16x128xf32>
    %30 = arith.mulf %27, %29 : vector<16x128xf32>
    %c0_15 = arith.constant 0 : index
    %c0_16 = arith.constant 0 : index
    %31 = vector.load %arg5[%c0_15, %c0_16] : memref<1x128xf32, #tpu.memory_space<vmem>>, vector<1x128xf32>
    %32 = vector.broadcast %31 : vector<1x128xf32> to vector<16x128xf32>
    %33 = arith.addf %30, %32 : vector<16x128xf32>
    %c0_17 = arith.constant 0 : index
    %c0_18 = arith.constant 0 : index
    %34 = vector.load %arg6[%c0_17, %c0_18] : memref<128x128xf32, #tpu.memory_space<vmem>>, vector<128x128xf32>
    %cst_19 = arith.constant dense<0.000000e+00> : vector<16x128xf32>
    %35 = tpu.matmul %33, %34, %cst_19 {dimension_numbers = #tpu.dot_dimension_numbers<[1], [0], [0], [1], [0, 0, 1, 1], [], []>} : vector<16x128xf32>, vector<128x128xf32>, vector<16x128xf32> -> vector<16x128xf32>
    %c0_20 = arith.constant 0 : index
    %c0_21 = arith.constant 0 : index
    %36 = vector.load %arg7[%c0_20, %c0_21] : memref<1x128xf32, #tpu.memory_space<vmem>>, vector<1x128xf32>
    %37 = vector.broadcast %36 : vector<1x128xf32> to vector<16x128xf32>
    %38 = arith.addf %35, %37 : vector<16x128xf32>
    %cst_22 = arith.constant 5.000000e-01 : f32
    %39 = vector.broadcast %cst_22 : f32 to vector<16x128xf32>
    %40 = arith.mulf %39, %38 : vector<16x128xf32>
    %cst_23 = arith.constant 0.707106769 : f32
    %41 = vector.broadcast %cst_23 : f32 to vector<16x128xf32>
    %42 = arith.mulf %38, %41 : vector<16x128xf32>
    %43 = math.erf %42 : vector<16x128xf32>
    %cst_24 = arith.constant 1.000000e+00 : f32
    %44 = vector.broadcast %cst_24 : f32 to vector<16x128xf32>
    %45 = arith.addf %44, %43 : vector<16x128xf32>
    %46 = arith.mulf %40, %45 : vector<16x128xf32>
    %c0_25 = arith.constant 0 : index
    %c0_26 = arith.constant 0 : index
    %47 = vector.load %arg8[%c0_25, %c0_26] : memref<128x128xf32, #tpu.memory_space<vmem>>, vector<128x128xf32>
    %cst_27 = arith.constant dense<0.000000e+00> : vector<16x128xf32>
    %48 = tpu.matmul %46, %47, %cst_27 {dimension_numbers = #tpu.dot_dimension_numbers<[1], [0], [0], [1], [0, 0, 1, 1], [], []>} : vector<16x128xf32>, vector<128x128xf32>, vector<16x128xf32> -> vector<16x128xf32>
    %c0_28 = arith.constant 0 : index
    %c0_29 = arith.constant 0 : index
    %49 = vector.load %arg9[%c0_28, %c0_29] : memref<1x128xf32, #tpu.memory_space<vmem>>, vector<1x128xf32>
    %50 = vector.broadcast %49 : vector<1x128xf32> to vector<16x128xf32>
    %51 = arith.addf %48, %50 : vector<16x128xf32>
    %c0_30 = arith.constant 0 : index
    %c0_31 = arith.constant 0 : index
    %52 = vector.load %arg10[%c0_30, %c0_31] : memref<16x128xf32, #tpu.memory_space<vmem>>, vector<16x128xf32>
    %53 = arith.addf %52, %51 : vector<16x128xf32>
    %c0_32 = arith.constant 0 : index
    %c0_33 = arith.constant 0 : index
    %54 = vector.load %arg10[%c0_32, %c0_33] : memref<16x128xf32, #tpu.memory_space<vmem>>, vector<16x128xf32>
    tpu.vector_store %arg10[%c0_32, %c0_33], %53 {strides = array<i32>} : memref<16x128xf32, #tpu.memory_space<vmem>>, vector<16x128xf32>,
    return
  }
  func.func @transform_0(%arg0: i32) -> (i32, i32) {
    %c0_i32 = arith.constant 0 : i32
    %c0_i32_0 = arith.constant 0 : i32
    return %arg0, %c0_i32 : i32, i32
  }
  func.func @transform_1(%arg0: i32) -> (i32, i32) {
    %c0_i32 = arith.constant 0 : i32
    %c0_i32_0 = arith.constant 0 : i32
    %c0_i32_1 = arith.constant 0 : i32
    return %c0_i32, %c0_i32_0 : i32, i32
  }
  func.func @transform_2(%arg0: i32) -> (i32, i32) {
    %c0_i32 = arith.constant 0 : i32
    %c0_i32_0 = arith.constant 0 : i32
    %c0_i32_1 = arith.constant 0 : i32
    return %c0_i32, %c0_i32_0 : i32, i32
  }
  func.func @transform_3(%arg0: i32) -> (i32, i32) {
    %c0_i32 = arith.constant 0 : i32
    %c0_i32_0 = arith.constant 0 : i32
    %c0_i32_1 = arith.constant 0 : i32
    return %c0_i32, %c0_i32_0 : i32, i32
  }
  func.func @transform_4(%arg0: i32) -> (i32, i32) {
    %c0_i32 = arith.constant 0 : i32
    %c0_i32_0 = arith.constant 0 : i32
    %c0_i32_1 = arith.constant 0 : i32
    return %c0_i32, %c0_i32_0 : i32, i32
  }
  func.func @transform_5(%arg0: i32) -> (i32, i32) {
    %c0_i32 = arith.constant 0 : i32
    %c0_i32_0 = arith.constant 0 : i32
    %c0_i32_1 = arith.constant 0 : i32
    return %c0_i32, %c0_i32_0 : i32, i32
  }
  func.func @transform_6(%arg0: i32) -> (i32, i32) {
    %c0_i32 = arith.constant 0 : i32
    %c0_i32_0 = arith.constant 0 : i32
    %c0_i32_1 = arith.constant 0 : i32
    return %c0_i32, %c0_i32_0 : i32, i32
  }
  func.func @transform_7(%arg0: i32) -> (i32, i32) {
    %c0_i32 = arith.constant 0 : i32
    %c0_i32_0 = arith.constant 0 : i32
    %c0_i32_1 = arith.constant 0 : i32
    return %c0_i32, %c0_i32_0 : i32, i32
  }
  func.func @transform_8(%arg0: i32) -> (i32, i32) {
    %c0_i32 = arith.constant 0 : i32
    %c0_i32_0 = arith.constant 0 : i32
    %c0_i32_1 = arith.constant 0 : i32
    return %c0_i32, %c0_i32_0 : i32, i32
  }
  func.func @transform_9(%arg0: i32) -> (i32, i32) {
    %c0_i32 = arith.constant 0 : i32
    %c0_i32_0 = arith.constant 0 : i32
    return %arg0, %c0_i32 : i32, i32
  }
}

module attributes {stable_mosaic.version = 11 : i64} {
  func.func @_block_kernel(%arg0: i32, %arg1: memref<16x16xf32, #tpu.memory_space<vmem>>, %arg2: memref<16x128xf32, #tpu.memory_space<vmem>>, %arg3: memref<1x128xf32, #tpu.memory_space<vmem>>, %arg4: memref<1x128xf32, #tpu.memory_space<vmem>>, %arg5: memref<1x128xf32, #tpu.memory_space<vmem>>, %arg6: memref<128x128xf32, #tpu.memory_space<vmem>>, %arg7: memref<1x128xf32, #tpu.memory_space<vmem>>, %arg8: memref<128x128xf32, #tpu.memory_space<vmem>>, %arg9: memref<1x128xf32, #tpu.memory_space<vmem>>, %arg10: memref<16x128xf32, #tpu.memory_space<vmem>>) attributes {dimension_semantics = [#tpu.dimension_semantics<parallel>], iteration_bounds = array<i64: 1>, scalar_prefetch = 0 : i64, scratch_operands = 0 : i64, tpu.core_type = #tpu.core_type<tc>, window_params = [{transform_indices = @transform_0, window_bounds = array<i64: 16, 16>}, {pipeline_mode = #tpu.pipeline_mode<synchronous>, transform_indices = @transform_1, window_bounds = array<i64: 16, 128>}, {pipeline_mode = #tpu.pipeline_mode<synchronous>, transform_indices = @transform_2, window_bounds = array<i64: 1, 128>}, {pipeline_mode = #tpu.pipeline_mode<synchronous>, transform_indices = @transform_3, window_bounds = array<i64: 1, 128>}, {pipeline_mode = #tpu.pipeline_mode<synchronous>, transform_indices = @transform_4, window_bounds = array<i64: 1, 128>}, {pipeline_mode = #tpu.pipeline_mode<synchronous>, transform_indices = @transform_5, window_bounds = array<i64: 128, 128>}, {pipeline_mode = #tpu.pipeline_mode<synchronous>, transform_indices = @transform_6, window_bounds = array<i64: 1, 128>}, {pipeline_mode = #tpu.pipeline_mode<synchronous>, transform_indices = @transform_7, window_bounds = array<i64: 128, 128>}, {pipeline_mode = #tpu.pipeline_mode<synchronous>, transform_indices = @transform_8, window_bounds = array<i64: 1, 128>}, {transform_indices = @transform_9, window_bounds = array<i64: 16, 128>}]} {
    %c0 = arith.constant 0 : index
    %c0_0 = arith.constant 0 : index
    %0 = vector.load %arg1[%c0, %c0_0] : memref<16x16xf32, #tpu.memory_space<vmem>>, vector<16x16xf32>
    %c0_1 = arith.constant 0 : index
    %c0_2 = arith.constant 0 : index
    %1 = vector.load %arg2[%c0_1, %c0_2] : memref<16x128xf32, #tpu.memory_space<vmem>>, vector<16x128xf32>
    %cst = arith.constant dense<0.000000e+00> : vector<16x128xf32>
    %2 = tpu.matmul %0, %1, %cst {dimension_numbers = #tpu.dot_dimension_numbers<[1], [0], [0], [1], [0, 0, 1, 1], [], []>} : vector<16x16xf32>, vector<16x128xf32>, vector<16x128xf32> -> vector<16x128xf32>
    %c0_3 = arith.constant 0 : index
    %c0_4 = arith.constant 0 : index
    %3 = vector.load %arg3[%c0_3, %c0_4] : memref<1x128xf32, #tpu.memory_space<vmem>>, vector<1x128xf32>
    %4 = vector.broadcast %3 : vector<1x128xf32> to vector<16x128xf32>
    %5 = arith.addf %2, %4 : vector<16x128xf32>
    %c0_5 = arith.constant 0 : index
    %c0_6 = arith.constant 0 : index
    %6 = vector.load %arg10[%c0_5, %c0_6] : memref<16x128xf32, #tpu.memory_space<vmem>>, vector<16x128xf32>
    tpu.vector_store %arg10[%c0_5, %c0_6], %5 {strides = array<i32>} : memref<16x128xf32, #tpu.memory_space<vmem>>, vector<16x128xf32>,
    %cst_7 = arith.constant dense<0.000000e+00> : vector<16xf32>
    %7 = vector.multi_reduction <add>, %5, %cst_7 [1] : vector<16x128xf32> to vector<16xf32>
    %8 = vector.shape_cast %7 : vector<16xf32> to vector<16x1xf32>
    %cst_8 = arith.constant 3.125000e-02 : f32
    %9 = vector.broadcast %cst_8 : f32 to vector<16x1xf32>
    %10 = arith.mulf %8, %9 : vector<16x1xf32>
    %11 = vector.broadcast %10 : vector<16x1xf32> to vector<16x128xf32>
    %12 = arith.subf %5, %11 : vector<16x128xf32>
    %13 = tpu.iota {dimensions = array<i32: 1>} : vector<16x128xi32>
    %c32_i32 = arith.constant 32 : i32
    %14 = vector.broadcast %c32_i32 : i32 to vector<16x128xi32>
    %15 = arith.cmpi slt, %13, %14 : vector<16x128xi32>
    %cst_9 = arith.constant 0.000000e+00 : f32
    %16 = vector.broadcast %cst_9 : f32 to vector<16x128xf32>
    %17 = arith.select %15, %12, %16 : vector<16x128xi1>, vector<16x128xf32>
    %18 = arith.mulf %17, %17 : vector<16x128xf32>
    %cst_10 = arith.constant dense<0.000000e+00> : vector<16xf32>
    %19 = vector.multi_reduction <add>, %18, %cst_10 [1] : vector<16x128xf32> to vector<16xf32>
    %20 = vector.shape_cast %19 : vector<16xf32> to vector<16x1xf32>
    %cst_11 = arith.constant 3.125000e-02 : f32
    %21 = vector.broadcast %cst_11 : f32 to vector<16x1xf32>
    %22 = arith.mulf %20, %21 : vector<16x1xf32>
    %cst_12 = arith.constant 9.99999974E-6 : f32
    %23 = vector.broadcast %cst_12 : f32 to vector<16x1xf32>
    %24 = arith.addf %22, %23 : vector<16x1xf32>
    %25 = math.rsqrt %24 : vector<16x1xf32>
    %26 = vector.broadcast %25 : vector<16x1xf32> to vector<16x128xf32>
    %27 = arith.mulf %17, %26 : vector<16x128xf32>
    %c0_13 = arith.constant 0 : index
    %c0_14 = arith.constant 0 : index
    %28 = vector.load %arg4[%c0_13, %c0_14] : memref<1x128xf32, #tpu.memory_space<vmem>>, vector<1x128xf32>
    %29 = vector.broadcast %28 : vector<1x128xf32> to vector<16x128xf32>
    %30 = arith.mulf %27, %29 : vector<16x128xf32>
    %c0_15 = arith.constant 0 : index
    %c0_16 = arith.constant 0 : index
    %31 = vector.load %arg5[%c0_15, %c0_16] : memref<1x128xf32, #tpu.memory_space<vmem>>, vector<1x128xf32>
    %32 = vector.broadcast %31 : vector<1x128xf32> to vector<16x128xf32>
    %33 = arith.addf %30, %32 : vector<16x128xf32>
    %c0_17 = arith.constant 0 : index
    %c0_18 = arith.constant 0 : index
    %34 = vector.load %arg6[%c0_17, %c0_18] : memref<128x128xf32, #tpu.memory_space<vmem>>, vector<128x128xf32>
    %cst_19 = arith.constant dense<0.000000e+00> : vector<16x128xf32>
    %35 = tpu.matmul %33, %34, %cst_19 {dimension_numbers = #tpu.dot_dimension_numbers<[1], [0], [0], [1], [0, 0, 1, 1], [], []>} : vector<16x128xf32>, vector<128x128xf32>, vector<16x128xf32> -> vector<16x128xf32>
    %c0_20 = arith.constant 0 : index
    %c0_21 = arith.constant 0 : index
    %36 = vector.load %arg7[%c0_20, %c0_21] : memref<1x128xf32, #tpu.memory_space<vmem>>, vector<1x128xf32>
    %37 = vector.broadcast %36 : vector<1x128xf32> to vector<16x128xf32>
    %38 = arith.addf %35, %37 : vector<16x128xf32>
    %cst_22 = arith.constant 5.000000e-01 : f32
    %39 = vector.broadcast %cst_22 : f32 to vector<16x128xf32>
    %40 = arith.mulf %39, %38 : vector<16x128xf32>
    %cst_23 = arith.constant 0.707106769 : f32
    %41 = vector.broadcast %cst_23 : f32 to vector<16x128xf32>
    %42 = arith.mulf %38, %41 : vector<16x128xf32>
    %43 = math.erf %42 : vector<16x128xf32>
    %cst_24 = arith.constant 1.000000e+00 : f32
    %44 = vector.broadcast %cst_24 : f32 to vector<16x128xf32>
    %45 = arith.addf %44, %43 : vector<16x128xf32>
    %46 = arith.mulf %40, %45 : vector<16x128xf32>
    %c0_25 = arith.constant 0 : index
    %c0_26 = arith.constant 0 : index
    %47 = vector.load %arg8[%c0_25, %c0_26] : memref<128x128xf32, #tpu.memory_space<vmem>>, vector<128x128xf32>
    %cst_27 = arith.constant dense<0.000000e+00> : vector<16x128xf32>
    %48 = tpu.matmul %46, %47, %cst_27 {dimension_numbers = #tpu.dot_dimension_numbers<[1], [0], [0], [1], [0, 0, 1, 1], [], []>} : vector<16x128xf32>, vector<128x128xf32>, vector<16x128xf32> -> vector<16x128xf32>
    %c0_28 = arith.constant 0 : index
    %c0_29 = arith.constant 0 : index
    %49 = vector.load %arg9[%c0_28, %c0_29] : memref<1x128xf32, #tpu.memory_space<vmem>>, vector<1x128xf32>
    %50 = vector.broadcast %49 : vector<1x128xf32> to vector<16x128xf32>
    %51 = arith.addf %48, %50 : vector<16x128xf32>
    %c0_30 = arith.constant 0 : index
    %c0_31 = arith.constant 0 : index
    %52 = vector.load %arg10[%c0_30, %c0_31] : memref<16x128xf32, #tpu.memory_space<vmem>>, vector<16x128xf32>
    %53 = arith.addf %52, %51 : vector<16x128xf32>
    %c0_32 = arith.constant 0 : index
    %c0_33 = arith.constant 0 : index
    %54 = vector.load %arg10[%c0_32, %c0_33] : memref<16x128xf32, #tpu.memory_space<vmem>>, vector<16x128xf32>
    tpu.vector_store %arg10[%c0_32, %c0_33], %53 {strides = array<i32>} : memref<16x128xf32, #tpu.memory_space<vmem>>, vector<16x128xf32>,
    return
  }
  func.func @transform_0(%arg0: i32) -> (i32, i32) {
    %c0_i32 = arith.constant 0 : i32
    %c0_i32_0 = arith.constant 0 : i32
    return %arg0, %c0_i32 : i32, i32
  }
  func.func @transform_1(%arg0: i32) -> (i32, i32) {
    %c0_i32 = arith.constant 0 : i32
    %c0_i32_0 = arith.constant 0 : i32
    %c0_i32_1 = arith.constant 0 : i32
    return %c0_i32, %c0_i32_0 : i32, i32
  }
  func.func @transform_2(%arg0: i32) -> (i32, i32) {
    %c0_i32 = arith.constant 0 : i32
    %c0_i32_0 = arith.constant 0 : i32
    %c0_i32_1 = arith.constant 0 : i32
    return %c0_i32, %c0_i32_0 : i32, i32
  }
  func.func @transform_3(%arg0: i32) -> (i32, i32) {
    %c0_i32 = arith.constant 0 : i32
    %c0_i32_0 = arith.constant 0 : i32
    %c0_i32_1 = arith.constant 0 : i32
    return %c0_i32, %c0_i32_0 : i32, i32
  }
  func.func @transform_4(%arg0: i32) -> (i32, i32) {
    %c0_i32 = arith.constant 0 : i32
    %c0_i32_0 = arith.constant 0 : i32
    %c0_i32_1 = arith.constant 0 : i32
    return %c0_i32, %c0_i32_0 : i32, i32
  }
  func.func @transform_5(%arg0: i32) -> (i32, i32) {
    %c0_i32 = arith.constant 0 : i32
    %c0_i32_0 = arith.constant 0 : i32
    %c0_i32_1 = arith.constant 0 : i32
    return %c0_i32, %c0_i32_0 : i32, i32
  }
  func.func @transform_6(%arg0: i32) -> (i32, i32) {
    %c0_i32 = arith.constant 0 : i32
    %c0_i32_0 = arith.constant 0 : i32
    %c0_i32_1 = arith.constant 0 : i32
    return %c0_i32, %c0_i32_0 : i32, i32
  }
  func.func @transform_7(%arg0: i32) -> (i32, i32) {
    %c0_i32 = arith.constant 0 : i32
    %c0_i32_0 = arith.constant 0 : i32
    %c0_i32_1 = arith.constant 0 : i32
    return %c0_i32, %c0_i32_0 : i32, i32
  }
  func.func @transform_8(%arg0: i32) -> (i32, i32) {
    %c0_i32 = arith.constant 0 : i32
    %c0_i32_0 = arith.constant 0 : i32
    %c0_i32_1 = arith.constant 0 : i32
    return %c0_i32, %c0_i32_0 : i32, i32
  }
  func.func @transform_9(%arg0: i32) -> (i32, i32) {
    %c0_i32 = arith.constant 0 : i32
    %c0_i32_0 = arith.constant 0 : i32
    return %arg0, %c0_i32 : i32, i32
  }
}

</mosaic_0001>

<bundles_post_ra>
// kernel: tpu_custom_call.1
= control target key start
LH: loop header
LB: loop body
LE: loop exit
PB: predicated region body
PF: predicated region fallthrough
CT: control target
= control target key end

     0   :  { %14 = vsyncpa [#allocation3], 0  ;;  %s742_s0 = inlined_call_operand.hbm [shape: f32[16,16], index: 0, kind: input, shape index: {}]   ;;  %s743_s1 = inlined_call_operand.hbm [shape: f32[16,128], index: 1, kind: input, shape index: {}]   ;;  %s744_s2 = inlined_call_operand.vmem [shape: f32[1,128], index: 2, kind: input, shape index: {}]   ;;  %s745_s3 = inlined_call_operand.vmem [shape: f32[1,128], index: 3, kind: input, shape index: {}]   ;;  %s746_s4 = inlined_call_operand.vmem [shape: f32[1,128], index: 4, kind: input, shape index: {}]   ;;  %s747_s5 = inlined_call_operand.hbm [shape: f32[128,128], index: 5, kind: input, shape index: {}]   ;;  %s748_s6 = inlined_call_operand.vmem [shape: f32[1,128], index: 6, kind: input, shape index: {}]   ;;  %s749_s7 = inlined_call_operand.hbm [shape: f32[128,128], index: 7, kind: input, shape index: {}]   ;;  %s750_s8 = inlined_call_operand.vmem [shape: f32[1,128], index: 8, kind: input, shape index: {}]   ;;  %s751_s9 = inlined_call_operand.hbm [shape: f32[16,128], index: 9, kind: output, shape index: {}]  }
   0x1   :  { %15 = vsyncpa [#allocation6], 0 }
   0x2   :  { %16 = vsyncpa [#allocation9], 0 }
   0x3   :  { %17 = vsyncpa [#allocation4], 0  ;;  %s35_s11 = sshll.u32 %s743_s1, 4  ;;  %s578_s12 = smov [#allocation5]   ;;  %s36_s11 = int_to_ptr.hbm [resolvable:$true] %s35_s11 }
   0x4   :  { %s37_s13 = sshll.u32 %s578_s12, 4  ;;  %s22_s16 = sshll.u32 %s742_s0, 4  ;;  %s38_s13 = int_to_ptr.vmem [resolvable:$true] %s37_s13  ;;  %s23_s16 = int_to_ptr.hbm [resolvable:$true] %s22_s16 }
   0x5   :  { %s579_s17 = smov 128   ;;  %s580_s18 = smov 8  }
   0x6   :  { %43 = dma.hbm_to_vmem [thread:$0]  %s36_s11, 256, %s38_s13, [#allocation6], %s579_s17, %s579_s17, %s580_s18  }
   0x7   :  { %s581_s19 = smov [#allocation2]   ;;  %s54_s1 = sshll.u32 %s747_s5, 4  ;;  %s55_s1 = int_to_ptr.hbm [resolvable:$true] %s54_s1 }
   0x8   :  { %s24_s20 = sshll.u32 %s581_s19, 4  ;;  %s69_s24 = sshll.u32 %s749_s7, 4  ;;  %s25_s20 = int_to_ptr.vmem [resolvable:$true] %s24_s20  ;;  %s70_s24 = int_to_ptr.hbm [resolvable:$true] %s69_s24 }
   0x9   :  { %30 = dma.hbm_to_vmem [thread:$0]  %s23_s16, 256, %s25_s20, [#allocation3], %s579_s17, %s579_s17, %s580_s18  }
   0xa   :  { %s582_s25 = smov [#allocation7]   ;;  %s583_s27 = smov [#allocation8]  }
   0xb   :  { %s56_s26 = sshll.u32 %s582_s25, 4  ;;  %s71_s5 = sshll.u32 %s583_s27, 4  ;;  %s57_s26 = int_to_ptr.vmem [resolvable:$true] %s56_s26  ;;  %s72_s5 = int_to_ptr.vmem [resolvable:$true] %s71_s5 }
   0xc   :  { %62 = dma.hbm_to_vmem [thread:$0]  %s55_s1, 2048, %s57_s26, [#allocation6], %s579_s17, %s579_s17, %s580_s18  }
   0xd   :  { %77 = dma.hbm_to_vmem [thread:$0]  %s70_s24, 2048, %s72_s5, [#allocation9], %s579_s17, %s579_s17, %s580_s18  }
   0xe   :  { %570 = dma.done.wait [#allocation3], 256  }
   0xf   :  { %571 = vsyncadd [#allocation3], 4294967040 }
  0x10   :  { %572 = dma.done.wait [#allocation6], 2304  }
  0x11   :  { %573 = vsyncadd [#allocation6], 4294964992 }
  0x12   :  { %574 = dma.done.wait [#allocation9], 2048  }
  0x13   :  { %575 = vsyncadd [#allocation9], 4294965248  ;;  %v99_v0 = vld [vmem:[#allocation5 + $0x8] sm:$0xff]  ;;  %v98_v1 = vld [vmem:[#allocation5] sm:$0xff]  ;;  %vm104_vm0 = vcmask 130048   ;;  %v144_v11 = vlaneseq  ;;  %s584_s12 = smov [#allocation10]  }
  0x14   :  { %125 = vmatpush.msra.mxu0 %v99_v0  ;;  %v96_v2 = vld [vmem:[#allocation2] sm:$0xff]  ;;  %v97_v3 = vld [vmem:[#allocation2 + $0x8] sm:$0xff]  ;;  %v208_v9 = vld [vmem:[#allocation7 + $0x78] sm:$0xff]  ;;  %s377_s13 = sshll.u32 %s584_s12, 4  ;;  %s379_s16 = sshll.u32 %s751_s9, 4  ;;  %s378_s13 = int_to_ptr.vmem [resolvable:$true] %s377_s13  ;;  %s380_s16 = int_to_ptr.hbm [resolvable:$true] %s379_s16 }
  0x15   :  { %v437_v5 = vld [vmem:[%s744_s2] ss:$0 sm:$0xff]  ;;  %v207_v10 = vld [vmem:[#allocation7 + $0x70] sm:$0xff]  ;;  %398 = vmatpush.msra.mxu3 %v208_v9  ;;  %213 = vmatpush.msra.mxu1 %v208_v9  ;;  %v145_v12 = vand.u32 127, %v144_v11  ;;  %v206_v23 = vld [vmem:[#allocation7 + $0x68] sm:$0xff] }
  0x16   :  { %126 = vmatpush.msra.mxu0 %v98_v1  ;;  %v205_v24 = vld [vmem:[#allocation7 + $0x60] sm:$0xff]  ;;  %v204_v25 = vld [vmem:[#allocation7 + $0x58] sm:$0xff]  ;;  %v203_v26 = vld [vmem:[#allocation7 + $0x50] sm:$0xff] }
  0x17   :  { %394 = vmatmul.msk.f32.vlgmr.msra.gmra.mxu0 %vm104_vm0, %v96_v2  ;;  %399 = vmatpush.msra.mxu3 %v207_v10  ;;  %vm146_vm1 = vcmp.lt.s32.totalorder %v145_v12, 32  ;;  %v202_v27 = vld [vmem:[#allocation7 + $0x48] sm:$0xff]  ;;  %v201_v28 = vld [vmem:[#allocation7 + $0x40] sm:$0xff]  ;;  %v200_v29 = vld [vmem:[#allocation7 + $0x38] sm:$0xff] }
  0x18   :  { %214 = vmatpush.msra.mxu1 %v207_v10  ;;  %v199_v30 = vld [vmem:[#allocation7 + $0x30] sm:$0xff]  ;;  %v198_v31 = vld [vmem:[#allocation7 + $0x28] sm:$0xff]  ;;  %v197_v32 = vld [vmem:[#allocation7 + $0x20] sm:$0xff] }
  0x19   :  { %400 = vmatpush.msra.mxu3 %v206_v23  ;;  %v196_v33 = vld [vmem:[#allocation7 + $0x18] sm:$0xff]  ;;  %v195_v34 = vld [vmem:[#allocation7 + $0x10] sm:$0xff]  ;;  %v194_v35 = vld [vmem:[#allocation7 + $0x8] sm:$0xff] }
  0x1a   :  { %215 = vmatpush.msra.mxu1 %v206_v23  ;;  %v193_v36 = vld [vmem:[#allocation7] sm:$0xff]  ;;  %v339_v1 = vld [vmem:[#allocation8 + $0x78] sm:$0xff]  ;;  %v338_v2 = vld [vmem:[#allocation8 + $0x70] sm:$0xff] }
  0x1b   :  { %401 = vmatpush.msra.mxu3 %v205_v24  ;;  %v438_v51 = vld [vmem:[%s745_s3] ss:$0 sm:$0xff]  ;;  %414 = vmatpush.msra.mxu2 %v339_v1  ;;  %v334_v11 = vld [vmem:[#allocation8 + $0x50] sm:$0xff] }
  0x1c   :  { %216 = vmatpush.msra.mxu1 %v205_v24  ;;  %v439_v55 = vld [vmem:[%s746_s4] ss:$0 sm:$0xff]  ;;  %344 = vmatpush.msrb.mxu0 %v339_v1  ;;  %v330_v24 = vld [vmem:[#allocation8 + $0x30] sm:$0xff] }
  0x1d   :  { %402 = vmatpush.msra.mxu3 %v204_v25  ;;  %415 = vmatpush.msra.mxu2 %v338_v2 }
  0x1e   :  { %217 = vmatpush.msra.mxu1 %v204_v25  ;;  %345 = vmatpush.msrb.mxu0 %v338_v2 }
  0x1f   :  { %395 = vmatmul.msk.f32.gmra.mxu0 %vm104_vm0, %v97_v3  ;;  %403 = vmatpush.msra.mxu3 %v203_v26  ;;  %v337_v3 = vld [vmem:[#allocation8 + $0x68] sm:$0xff] }
  0x20   :  { %218 = vmatpush.msra.mxu1 %v203_v26  ;;  %416 = vmatpush.msra.mxu2 %v337_v3 }
  0x21   :  { %404 = vmatpush.msra.mxu3 %v202_v27  ;;  %346 = vmatpush.msrb.mxu0 %v337_v3 }
  0x22   :  { %219 = vmatpush.msra.mxu1 %v202_v27 }
  0x23   :  { %405 = vmatpush.msra.mxu3 %v201_v28 }
  0x24   :  { %220 = vmatpush.msra.mxu1 %v201_v28 }
  0x25   :  { %406 = vmatpush.msra.mxu3 %v200_v29 }
  0x26   :  { %221 = vmatpush.msra.mxu1 %v200_v29  ;;  %v329_v29 = vld [vmem:[#allocation8 + $0x28] sm:$0xff] }
  0x27   :  { %407 = vmatpush.msra.mxu3 %v199_v30 }
  0x28   :  { %222 = vmatpush.msra.mxu1 %v199_v30 }
  0x29   :  { %408 = vmatpush.msra.mxu3 %v198_v31 }
  0x2a   :  { %223 = vmatpush.msra.mxu1 %v198_v31 }
  0x2b   :  { %409 = vmatpush.msra.mxu3 %v197_v32 }
  0x2c   :  { %224 = vmatpush.msra.mxu1 %v197_v32 }
  0x2d   :  { %410 = vmatpush.msra.mxu3 %v196_v33 }
  0x2e   :  { %225 = vmatpush.msra.mxu1 %v196_v33 }
  0x2f   :  { %411 = vmatpush.msra.mxu3 %v195_v34 }
  0x30   :  { %226 = vmatpush.msra.mxu1 %v195_v34  ;;  %v328_v34 = vld [vmem:[#allocation8 + $0x20] sm:$0xff] }
  0x31   :  { %412 = vmatpush.msra.mxu3 %v194_v35 }
  0x32   :  { %227 = vmatpush.msra.mxu1 %v194_v35 }
  0x33   :  { %413 = vmatpush.msra.mxu3 %v193_v36 }
  0x34   :  { %228 = vmatpush.msra.mxu1 %v193_v36 }
  0x94   :  { %v128_v4 = vpop.f32.mrf.mxu0 }
  0x95   :  { %v665_v8 = vadd.f32 %v437_v5, %v128_v4  ;;  %v440_v4 = vld [vmem:[%s748_s6] ss:$0 sm:$0xff] }
  0x9c   :  { %v131_v6 = vpop.f32.mrf.mxu0 }
  0x9d   :  { %v662_v7 = vadd.f32 %v437_v5, %v131_v6  ;;  %v336_v5 = vld [vmem:[#allocation8 + $0x60] sm:$0xff]  ;;  %v335_v6 = vld [vmem:[#allocation8 + $0x58] sm:$0xff] }
  0x9e   :  { %417 = vmatpush.msra.mxu2 %v336_v5  ;;  %347 = vmatpush.msrb.mxu0 %v336_v5 }
  0x9f   :  { %138 = vadd.xlane.f32.xlu0 %v662_v7 }
  0xa0   :  { %418 = vmatpush.msra.mxu2 %v335_v6  ;;  %348 = vmatpush.msrb.mxu0 %v335_v6 }
  0xa2   :  { %419 = vmatpush.msra.mxu2 %v334_v11  ;;  %349 = vmatpush.msrb.mxu0 %v334_v11 }
  0xa7   :  { %136 = vadd.xlane.f32.xlu0 %v665_v8 }
 0x112   :  { %v139_v13 = vpop.xlane.xlu0 %138 }
 0x113   :  { %v141_v14 = vmul.f32 0.03125, %v139_v13 }
 0x115   :  { %v143_v15 = vsub.f32 %v662_v7, %v141_v14 }
 0x117   :  { %v669_v16 = vsel %vm146_vm1, %v143_v15, 0.0  ;;  %v333_v15 = vld [vmem:[#allocation8 + $0x48] sm:$0xff] }
 0x118   :  { %v150_v17 = vmul.f32 %v669_v16, %v669_v16  ;;  %420 = vmatpush.msra.mxu2 %v333_v15  ;;  %350 = vmatpush.msrb.mxu0 %v333_v15 }
 0x11a   :  { %153 = vadd.xlane.f32.xlu1 %v150_v17  ;;  %v137_v18 = vpop.xlane.xlu0 %136 }
 0x11b   :  { %v140_v19 = vmul.f32 0.03125, %v137_v18  ;;  %v332_v18 = vld [vmem:[#allocation8 + $0x40] sm:$0xff] }
 0x11c   :  { %421 = vmatpush.msra.mxu2 %v332_v18  ;;  %351 = vmatpush.msrb.mxu0 %v332_v18 }
 0x11d   :  { %v142_v20 = vsub.f32 %v665_v8, %v140_v19 }
 0x11f   :  { %v674_v21 = vsel %vm146_vm1, %v142_v20, 0.0 }
 0x120   :  { %v149_v22 = vmul.f32 %v674_v21, %v674_v21 }
 0x122   :  { %151 = vadd.xlane.f32.xlu1 %v149_v22 }
 0x18d   :  { %v154_v37 = vpop.xlane.xlu1 %153 }
 0x18e   :  { %v156_v38 = vmul.f32 0.03125, %v154_v37 }
 0x190   :  { %v158_v39 = vadd.f32 1e-05, %v156_v38  ;;  %v327_v38 = vld [vmem:[#allocation8 + $0x18] sm:$0xff] }
 0x192   :  { %442 = vrsqrt.f32 %v158_v39  ;;  %vm175_vm3 = vweird.f32 %v158_v39 }
 0x195   :  { %v152_v40 = vpop.xlane.xlu1 %151 }
 0x196   :  { %v155_v41 = vmul.f32 0.03125, %v152_v40  ;;  %v326_v40 = vld [vmem:[#allocation8 + $0x10] sm:$0xff] }
 0x198   :  { %v443_v42 = vpop.eup %442  ;;  %v157_v43 = vadd.f32 1e-05, %v155_v41 }
 0x199   :  { %v170_v44 = vmul.f32 %v443_v42, %v158_v39  ;;  %vm176_vm2 = vweird.f32 %v443_v42 }
 0x19a   :  { %444 = vrsqrt.f32 %v157_v43  ;;  %vm177_vm4 = vmor %vm175_vm3, %vm176_vm2  ;;  %vm165_vm6 = vweird.f32 %v157_v43 }
 0x19b   :  { %v171_v45 = vmul.f32 %v443_v42, %v170_v44  ;;  %v325_v44 = vld [vmem:[#allocation8 + $0x8] sm:$0xff] }
 0x19d   :  { %v172_v46 = vmul.f32 0.5, %v171_v45 }
 0x19f   :  { %v173_v47 = vsub.f32 1.5, %v172_v46 }
 0x1a0   :  { %v445_v48 = vpop.eup %444 }
 0x1a1   :  { %v174_v49 = vmul.f32 %v443_v42, %v173_v47  ;;  %v160_v50 = vmul.f32 %v445_v48, %v157_v43  ;;  %vm166_vm5 = vweird.f32 %v445_v48 }
 0x1a2   :  { %vm167_vm7 = vmor %vm165_vm6, %vm166_vm5 }
 0x1a3   :  { %v161_v52 = vmul.f32 %v445_v48, %v160_v50  ;;  %v178_v53 = vsel %vm177_vm4, %v443_v42, %v174_v49 }
 0x1a4   :  { %v180_v54 = vmul.f32 %v178_v53, %v669_v16 }
 0x1a5   :  { %v162_v56 = vmul.f32 0.5, %v161_v52 }
 0x1a6   :  { %v186_v57 = vmul.f32 %v438_v51, %v180_v54 }
 0x1a7   :  { %v163_v58 = vsub.f32 1.5, %v162_v56 }
 0x1a8   :  { %v192_v59 = vadd.f32 %v439_v55, %v186_v57 }
 0x1a9   :  { %v164_v60 = vmul.f32 %v445_v48, %v163_v58 }
 0x1aa   :  { %232 = vmatmul.f32.vlgmr.msra.gmra.mxu3 %v192_v59 }
 0x1ab   :  { %v168_v61 = vsel %vm167_vm7, %v445_v48, %v164_v60  ;;  %v324_v48 = vld [vmem:[#allocation8] sm:$0xff] }
 0x1ac   :  { %v179_v62 = vmul.f32 %v168_v61, %v674_v21  ;;  %v331_v21 = vld [vmem:[#allocation8 + $0x38] sm:$0xff] }
 0x1ad   :  { %422 = vmatpush.msra.mxu2 %v331_v21  ;;  %352 = vmatpush.msrb.mxu0 %v331_v21 }
 0x1ae   :  { %v185_v63 = vmul.f32 %v438_v51, %v179_v62 }
 0x1af   :  { %423 = vmatpush.msra.mxu2 %v330_v24  ;;  %353 = vmatpush.msrb.mxu0 %v330_v24 }
 0x1b0   :  { %v191_v0 = vadd.f32 %v439_v55, %v185_v63 }
 0x1b1   :  { %424 = vmatpush.msra.mxu2 %v329_v29  ;;  %354 = vmatpush.msrb.mxu0 %v329_v29 }
 0x1b2   :  { %229 = vmatmul.f32.vlgmr.msra.gmra.mxu1 %v191_v0 }
 0x1b3   :  { %425 = vmatpush.msra.mxu2 %v328_v34  ;;  %355 = vmatpush.msrb.mxu0 %v328_v34 }
 0x1b5   :  { %426 = vmatpush.msra.mxu2 %v327_v38  ;;  %356 = vmatpush.msrb.mxu0 %v327_v38 }
 0x1b7   :  { %427 = vmatpush.msra.mxu2 %v326_v40  ;;  %357 = vmatpush.msrb.mxu0 %v326_v40 }
 0x1b9   :  { %428 = vmatpush.msra.mxu2 %v325_v44  ;;  %358 = vmatpush.msrb.mxu0 %v325_v44 }
 0x1bb   :  { %429 = vmatpush.msra.mxu2 %v324_v48  ;;  %359 = vmatpush.msrb.mxu0 %v324_v48 }
 0x22d   :  { %v233_v9 = vpop.f32.mrf.mxu3 }
 0x22e   :  { %v689_v10 = vadd.f32 %v440_v4, %v233_v9 }
 0x22f   :  { %v230_v12 = vpop.f32.mrf.mxu1 }
 0x230   :  { %v692_v13 = vmul.f32 0.70710677, %v689_v10  ;;  %v694_v14 = vadd.f32 %v440_v4, %v230_v12  ;;  %v237_v38 = vmul.f32 0.5, %v689_v10 }
 0x232   :  { %v280_v16 = vmul.f32 %v692_v13, %v692_v13  ;;  %v699_v17 = vmul.f32 0.70710677, %v694_v14  ;;  %v236_v40 = vmul.f32 0.5, %v694_v14 }
 0x234   :  { %v701_v19 = vmin.f32 %v280_v16, 16.0  ;;  %v240_v20 = vmul.f32 %v699_v17, %v699_v17 }
 0x236   :  { %v282_v22 = vmul.f32 2.1237322e-06, %v701_v19  ;;  %v706_v23 = vmin.f32 %v240_v20, 16.0  ;;  %v293_v25 = vmul.f32 3.8918573e-05, %v701_v19 }
 0x238   :  { %v283_v26 = vadd.f32 0.00028619796, %v282_v22  ;;  %v242_v27 = vmul.f32 2.1237322e-06, %v706_v23  ;;  %v253_v28 = vmul.f32 3.8918573e-05, %v706_v23 }
 0x239   :  { %v294_v30 = vadd.f32 0.001143296, %v293_v25 }
 0x23a   :  { %v284_v31 = vmul.f32 %v283_v26, %v701_v19  ;;  %v243_v32 = vadd.f32 0.00028619796, %v242_v27  ;;  %v254_v33 = vadd.f32 0.001143296, %v253_v28 }
 0x23b   :  { %v295_v35 = vmul.f32 %v294_v30, %v701_v19 }
 0x23c   :  { %v244_v36 = vmul.f32 %v243_v32, %v706_v23  ;;  %v255_v37 = vmul.f32 %v254_v33, %v706_v23  ;;  %v285_v39 = vadd.f32 0.0036580483, %v284_v31 }
 0x23d   :  { %v296_v41 = vadd.f32 0.014752088, %v295_v35 }
 0x23e   :  { %v256_v42 = vadd.f32 0.014752088, %v255_v37  ;;  %v245_v43 = vadd.f32 0.0036580483, %v244_v36  ;;  %v286_v47 = vmul.f32 %v285_v39, %v701_v19 }
 0x23f   :  { %v297_v45 = vmul.f32 %v296_v41, %v701_v19 }
 0x240   :  { %v257_v46 = vmul.f32 %v256_v42, %v706_v23  ;;  %v246_v51 = vmul.f32 %v245_v43, %v706_v23  ;;  %v287_v54 = vadd.f32 0.05243302, %v286_v47 }
 0x241   :  { %v298_v49 = vadd.f32 0.112945676, %v297_v45 }
 0x242   :  { %v258_v50 = vadd.f32 0.112945676, %v257_v46  ;;  %v247_v57 = vadd.f32 0.05243302, %v246_v51  ;;  %v288_v60 = vmul.f32 %v287_v54, %v701_v19 }
 0x243   :  { %v299_v52 = vmul.f32 %v298_v49, %v701_v19 }
 0x244   :  { %v259_v53 = vmul.f32 %v258_v50, %v706_v23  ;;  %v248_v63 = vmul.f32 %v247_v57, %v706_v23  ;;  %v289_v0 = vadd.f32 0.18741608, %v288_v60 }
 0x245   :  { %v300_v55 = vadd.f32 0.4994258, %v299_v52 }
 0x246   :  { %v260_v56 = vadd.f32 0.4994258, %v259_v53  ;;  %v249_v1 = vadd.f32 0.18741608, %v248_v63  ;;  %v290_v3 = vmul.f32 %v289_v0, %v701_v19 }
 0x247   :  { %v301_v58 = vmul.f32 %v300_v55, %v701_v19 }
 0x248   :  { %v261_v59 = vmul.f32 %v260_v56, %v706_v23  ;;  %v250_v6 = vmul.f32 %v249_v1, %v706_v23  ;;  %v291_v12 = vadd.f32 1.1283791, %v290_v3 }
 0x249   :  { %v302_v61 = vadd.f32 1.0, %v301_v58 }
 0x24a   :  { %v262_v62 = vadd.f32 1.0, %v261_v59  ;;  %v251_v22 = vadd.f32 1.1283791, %v250_v6  ;;  %v292_v23 = vmul.f32 %v291_v12, %v692_v13 }
 0x24b   :  { %446 = vrcp.f32 %v302_v61  ;;  %v314_v16 = vand.u32 2147483648, %v302_v61  ;;  %v312_v21 = vand.u32 2147483647, %v302_v61  ;;  %vm308_vm10 = vweird.f32 %v302_v61 }
 0x24c   :  { %448 = vrcp.f32 %v262_v62  ;;  %v274_v18 = vand.u32 2147483648, %v262_v62  ;;  %v272_v25 = vand.u32 2147483647, %v262_v62  ;;  %vm268_vm11 = vweird.f32 %v262_v62 }
 0x24d   :  { %v315_v27 = vor.u32 1.1754944e-38, %v314_v16  ;;  %vm313_vm14 = vcmp.eq.f32.partialorder %v312_v21, 8.507059e+37  ;;  %v252_v30 = vmul.f32 %v251_v22, %v699_v17  ;;  %v441_v17 = vld [vmem:[%s750_s8] ss:$0 sm:$0xff] }
 0x24e   :  { %v275_v28 = vor.u32 1.1754944e-38, %v274_v18  ;;  %vm273_vm15 = vcmp.eq.f32.partialorder %v272_v25, 8.507059e+37 }
 0x251   :  { %v447_v2 = vpop.eup %446 }
 0x252   :  { %v449_v4 = vpop.eup %448  ;;  %v304_v5 = vmul.f32 %v447_v2, %v302_v61  ;;  %vm309_vm8 = vweird.f32 %v447_v2 }
 0x253   :  { %v264_v9 = vmul.f32 %v449_v4, %v262_v62  ;;  %vm269_vm9 = vweird.f32 %v449_v4  ;;  %vm310_vm12 = vmor %vm308_vm10, %vm309_vm8 }
 0x254   :  { %v305_v11 = vsub.f32 1.0, %v304_v5  ;;  %vm270_vm13 = vmor %vm268_vm11, %vm269_vm9 }
 0x255   :  { %v265_v15 = vsub.f32 1.0, %v264_v9 }
 0x256   :  { %v306_v20 = vmul.f32 %v447_v2, %v305_v11 }
 0x257   :  { %v266_v24 = vmul.f32 %v449_v4, %v265_v15 }
 0x258   :  { %v307_v26 = vadd.f32 %v447_v2, %v306_v20 }
 0x259   :  { %v267_v19 = vadd.f32 %v449_v4, %v266_v24 }
 0x25a   :  { %v311_v29 = vsel %vm310_vm12, %v447_v2, %v307_v26 }
 0x25b   :  { %v271_v31 = vsel %vm270_vm13, %v449_v4, %v267_v19  ;;  %v316_v32 = vsel %vm313_vm14, %v315_v27, %v311_v29 }
 0x25c   :  { %v276_v33 = vsel %vm273_vm15, %v275_v28, %v271_v31  ;;  %v317_v34 = vmul.f32 %v316_v32, %v292_v23 }
 0x25d   :  { %v277_v35 = vmul.f32 %v276_v33, %v252_v30 }
 0x25e   :  { %v397_v36 = vclamps-f32 %v317_v34, 1.0 }
 0x25f   :  { %v396_v37 = vclamps-f32 %v277_v35, 1.0 }
 0x260   :  { %v321_v39 = vadd.f32 1.0, %v397_v36 }
 0x261   :  { %v320_v13 = vadd.f32 1.0, %v396_v37 }
 0x262   :  { %v323_v41 = vmul.f32 %v321_v39, %v237_v38 }
 0x263   :  { %v322_v42 = vmul.f32 %v320_v13, %v236_v40 }
 0x264   :  { %363 = vmatmul.f32.vlgmr.msra.gmra.mxu2 %v323_v41 }
 0x265   :  { %360 = vmatmul.f32.vlgmr.msrb.gmra.mxu0 %v322_v42 }
 0x2e2   :  { %v361_v43 = vpop.f32.mrf.mxu0 }
 0x2e3   :  { %v362_v44 = vadd.f32 %v441_v17, %v361_v43 }
 0x2e5   :  { %v369_v45 = vadd.f32 %v362_v44, %v665_v8 }
 0x2e7   :  { %371 = vst [vmem:[#allocation10] sm:$0xff] %v369_v45  ;;  %v364_v46 = vpop.f32.mrf.mxu2 }
 0x2e8   :  { %v365_v10 = vadd.f32 %v441_v17, %v364_v46 }
 0x2ea   :  { %v370_v14 = vadd.f32 %v365_v10, %v662_v7 }
 0x2ec   :  { %372 = vst [vmem:[#allocation10 + $0x8] sm:$0xff] %v370_v14 }
 0x2ed   :  { %385 = dma.vmem_to_hbm [thread:$0]  %s378_s13, 256, %s380_s16, [#allocation4], %s579_s17, %s579_s17, %s580_s18  }
 0x2ee   :  { %576 = dma.done.wait [#allocation4], 256  }
 0x2ef   :  { %577 = vsyncadd [#allocation4], 4294967040 }
 0x2f0   :  { %390 = vsyncpa [#allocation3], 1 }
 0x2f1   :  { %391 = vsyncpa [#allocation6], 1 }
 0x2f2   :  { %392 = vsyncpa [#allocation9], 1 }
 0x2f3   :  { %393 = vsyncpa [#allocation4], 1 }

// kernel: tpu_custom_call.1
= control target key start
LH: loop header
LB: loop body
LE: loop exit
PB: predicated region body
PF: predicated region fallthrough
CT: control target
= control target key end

     0   :  { %14 = vsyncpa [#allocation3], 0  ;;  %s742_s0 = inlined_call_operand.hbm [shape: f32[16,16], index: 0, kind: input, shape index: {}]   ;;  %s743_s1 = inlined_call_operand.hbm [shape: f32[16,128], index: 1, kind: input, shape index: {}]   ;;  %s744_s2 = inlined_call_operand.vmem [shape: f32[1,128], index: 2, kind: input, shape index: {}]   ;;  %s745_s3 = inlined_call_operand.vmem [shape: f32[1,128], index: 3, kind: input, shape index: {}]   ;;  %s746_s4 = inlined_call_operand.vmem [shape: f32[1,128], index: 4, kind: input, shape index: {}]   ;;  %s747_s5 = inlined_call_operand.hbm [shape: f32[128,128], index: 5, kind: input, shape index: {}]   ;;  %s748_s6 = inlined_call_operand.vmem [shape: f32[1,128], index: 6, kind: input, shape index: {}]   ;;  %s749_s7 = inlined_call_operand.hbm [shape: f32[128,128], index: 7, kind: input, shape index: {}]   ;;  %s750_s8 = inlined_call_operand.vmem [shape: f32[1,128], index: 8, kind: input, shape index: {}]   ;;  %s751_s9 = inlined_call_operand.hbm [shape: f32[16,128], index: 9, kind: output, shape index: {}]  }
   0x1   :  { %15 = vsyncpa [#allocation6], 0 }
   0x2   :  { %16 = vsyncpa [#allocation9], 0 }
   0x3   :  { %17 = vsyncpa [#allocation4], 0  ;;  %s35_s11 = sshll.u32 %s743_s1, 4  ;;  %s578_s12 = smov [#allocation5]   ;;  %s36_s11 = int_to_ptr.hbm [resolvable:$true] %s35_s11 }
   0x4   :  { %s37_s13 = sshll.u32 %s578_s12, 4  ;;  %s22_s16 = sshll.u32 %s742_s0, 4  ;;  %s38_s13 = int_to_ptr.vmem [resolvable:$true] %s37_s13  ;;  %s23_s16 = int_to_ptr.hbm [resolvable:$true] %s22_s16 }
   0x5   :  { %s579_s17 = smov 128   ;;  %s580_s18 = smov 8  }
   0x6   :  { %43 = dma.hbm_to_vmem [thread:$0]  %s36_s11, 256, %s38_s13, [#allocation6], %s579_s17, %s579_s17, %s580_s18  }
   0x7   :  { %s581_s19 = smov [#allocation2]   ;;  %s54_s1 = sshll.u32 %s747_s5, 4  ;;  %s55_s1 = int_to_ptr.hbm [resolvable:$true] %s54_s1 }
   0x8   :  { %s24_s20 = sshll.u32 %s581_s19, 4  ;;  %s69_s24 = sshll.u32 %s749_s7, 4  ;;  %s25_s20 = int_to_ptr.vmem [resolvable:$true] %s24_s20  ;;  %s70_s24 = int_to_ptr.hbm [resolvable:$true] %s69_s24 }
   0x9   :  { %30 = dma.hbm_to_vmem [thread:$0]  %s23_s16, 256, %s25_s20, [#allocation3], %s579_s17, %s579_s17, %s580_s18  }
   0xa   :  { %s582_s25 = smov [#allocation7]   ;;  %s583_s27 = smov [#allocation8]  }
   0xb   :  { %s56_s26 = sshll.u32 %s582_s25, 4  ;;  %s71_s5 = sshll.u32 %s583_s27, 4  ;;  %s57_s26 = int_to_ptr.vmem [resolvable:$true] %s56_s26  ;;  %s72_s5 = int_to_ptr.vmem [resolvable:$true] %s71_s5 }
   0xc   :  { %62 = dma.hbm_to_vmem [thread:$0]  %s55_s1, 2048, %s57_s26, [#allocation6], %s579_s17, %s579_s17, %s580_s18  }
   0xd   :  { %77 = dma.hbm_to_vmem [thread:$0]  %s70_s24, 2048, %s72_s5, [#allocation9], %s579_s17, %s579_s17, %s580_s18  }
   0xe   :  { %570 = dma.done.wait [#allocation3], 256  }
   0xf   :  { %571 = vsyncadd [#allocation3], 4294967040 }
  0x10   :  { %572 = dma.done.wait [#allocation6], 2304  }
  0x11   :  { %573 = vsyncadd [#allocation6], 4294964992 }
  0x12   :  { %574 = dma.done.wait [#allocation9], 2048  }
  0x13   :  { %575 = vsyncadd [#allocation9], 4294965248  ;;  %v99_v0 = vld [vmem:[#allocation5 + $0x8] sm:$0xff]  ;;  %v98_v1 = vld [vmem:[#allocation5] sm:$0xff]  ;;  %vm104_vm0 = vcmask 130048   ;;  %v144_v11 = vlaneseq  ;;  %s584_s12 = smov [#allocation10]  }
  0x14   :  { %125 = vmatpush.msra.mxu0 %v99_v0  ;;  %v96_v2 = vld [vmem:[#allocation2] sm:$0xff]  ;;  %v97_v3 = vld [vmem:[#allocation2 + $0x8] sm:$0xff]  ;;  %v208_v9 = vld [vmem:[#allocation7 + $0x78] sm:$0xff]  ;;  %s377_s13 = sshll.u32 %s584_s12, 4  ;;  %s379_s16 = sshll.u32 %s751_s9, 4  ;;  %s378_s13 = int_to_ptr.vmem [resolvable:$true] %s377_s13  ;;  %s380_s16 = int_to_ptr.hbm [resolvable:$true] %s379_s16 }
  0x15   :  { %v437_v5 = vld [vmem:[%s744_s2] ss:$0 sm:$0xff]  ;;  %v207_v10 = vld [vmem:[#allocation7 + $0x70] sm:$0xff]  ;;  %398 = vmatpush.msra.mxu3 %v208_v9  ;;  %213 = vmatpush.msra.mxu1 %v208_v9  ;;  %v145_v12 = vand.u32 127, %v144_v11  ;;  %v206_v23 = vld [vmem:[#allocation7 + $0x68] sm:$0xff] }
  0x16   :  { %126 = vmatpush.msra.mxu0 %v98_v1  ;;  %v205_v24 = vld [vmem:[#allocation7 + $0x60] sm:$0xff]  ;;  %v204_v25 = vld [vmem:[#allocation7 + $0x58] sm:$0xff]  ;;  %v203_v26 = vld [vmem:[#allocation7 + $0x50] sm:$0xff] }
  0x17   :  { %394 = vmatmul.msk.f32.vlgmr.msra.gmra.mxu0 %vm104_vm0, %v96_v2  ;;  %399 = vmatpush.msra.mxu3 %v207_v10  ;;  %vm146_vm1 = vcmp.lt.s32.totalorder %v145_v12, 32  ;;  %v202_v27 = vld [vmem:[#allocation7 + $0x48] sm:$0xff]  ;;  %v201_v28 = vld [vmem:[#allocation7 + $0x40] sm:$0xff]  ;;  %v200_v29 = vld [vmem:[#allocation7 + $0x38] sm:$0xff] }
  0x18   :  { %214 = vmatpush.msra.mxu1 %v207_v10  ;;  %v199_v30 = vld [vmem:[#allocation7 + $0x30] sm:$0xff]  ;;  %v198_v31 = vld [vmem:[#allocation7 + $0x28] sm:$0xff]  ;;  %v197_v32 = vld [vmem:[#allocation7 + $0x20] sm:$0xff] }
  0x19   :  { %400 = vmatpush.msra.mxu3 %v206_v23  ;;  %v196_v33 = vld [vmem:[#allocation7 + $0x18] sm:$0xff]  ;;  %v195_v34 = vld [vmem:[#allocation7 + $0x10] sm:$0xff]  ;;  %v194_v35 = vld [vmem:[#allocation7 + $0x8] sm:$0xff] }
  0x1a   :  { %215 = vmatpush.msra.mxu1 %v206_v23  ;;  %v193_v36 = vld [vmem:[#allocation7] sm:$0xff]  ;;  %v339_v1 = vld [vmem:[#allocation8 + $0x78] sm:$0xff]  ;;  %v338_v2 = vld [vmem:[#allocation8 + $0x70] sm:$0xff] }
  0x1b   :  { %401 = vmatpush.msra.mxu3 %v205_v24  ;;  %v438_v51 = vld [vmem:[%s745_s3] ss:$0 sm:$0xff]  ;;  %414 = vmatpush.msra.mxu2 %v339_v1  ;;  %v334_v11 = vld [vmem:[#allocation8 + $0x50] sm:$0xff] }
  0x1c   :  { %216 = vmatpush.msra.mxu1 %v205_v24  ;;  %v439_v55 = vld [vmem:[%s746_s4] ss:$0 sm:$0xff]  ;;  %344 = vmatpush.msrb.mxu0 %v339_v1  ;;  %v330_v24 = vld [vmem:[#allocation8 + $0x30] sm:$0xff] }
  0x1d   :  { %402 = vmatpush.msra.mxu3 %v204_v25  ;;  %415 = vmatpush.msra.mxu2 %v338_v2 }
  0x1e   :  { %217 = vmatpush.msra.mxu1 %v204_v25  ;;  %345 = vmatpush.msrb.mxu0 %v338_v2 }
  0x1f   :  { %395 = vmatmul.msk.f32.gmra.mxu0 %vm104_vm0, %v97_v3  ;;  %403 = vmatpush.msra.mxu3 %v203_v26  ;;  %v337_v3 = vld [vmem:[#allocation8 + $0x68] sm:$0xff] }
  0x20   :  { %218 = vmatpush.msra.mxu1 %v203_v26  ;;  %416 = vmatpush.msra.mxu2 %v337_v3 }
  0x21   :  { %404 = vmatpush.msra.mxu3 %v202_v27  ;;  %346 = vmatpush.msrb.mxu0 %v337_v3 }
  0x22   :  { %219 = vmatpush.msra.mxu1 %v202_v27 }
  0x23   :  { %405 = vmatpush.msra.mxu3 %v201_v28 }
  0x24   :  { %220 = vmatpush.msra.mxu1 %v201_v28 }
  0x25   :  { %406 = vmatpush.msra.mxu3 %v200_v29 }
  0x26   :  { %221 = vmatpush.msra.mxu1 %v200_v29  ;;  %v329_v29 = vld [vmem:[#allocation8 + $0x28] sm:$0xff] }
  0x27   :  { %407 = vmatpush.msra.mxu3 %v199_v30 }
  0x28   :  { %222 = vmatpush.msra.mxu1 %v199_v30 }
  0x29   :  { %408 = vmatpush.msra.mxu3 %v198_v31 }
  0x2a   :  { %223 = vmatpush.msra.mxu1 %v198_v31 }
  0x2b   :  { %409 = vmatpush.msra.mxu3 %v197_v32 }
  0x2c   :  { %224 = vmatpush.msra.mxu1 %v197_v32 }
  0x2d   :  { %410 = vmatpush.msra.mxu3 %v196_v33 }
  0x2e   :  { %225 = vmatpush.msra.mxu1 %v196_v33 }
  0x2f   :  { %411 = vmatpush.msra.mxu3 %v195_v34 }
  0x30   :  { %226 = vmatpush.msra.mxu1 %v195_v34  ;;  %v328_v34 = vld [vmem:[#allocation8 + $0x20] sm:$0xff] }
  0x31   :  { %412 = vmatpush.msra.mxu3 %v194_v35 }
  0x32   :  { %227 = vmatpush.msra.mxu1 %v194_v35 }
  0x33   :  { %413 = vmatpush.msra.mxu3 %v193_v36 }
  0x34   :  { %228 = vmatpush.msra.mxu1 %v193_v36 }
  0x94   :  { %v128_v4 = vpop.f32.mrf.mxu0 }
  0x95   :  { %v665_v8 = vadd.f32 %v437_v5, %v128_v4  ;;  %v440_v4 = vld [vmem:[%s748_s6] ss:$0 sm:$0xff] }
  0x9c   :  { %v131_v6 = vpop.f32.mrf.mxu0 }
  0x9d   :  { %v662_v7 = vadd.f32 %v437_v5, %v131_v6  ;;  %v336_v5 = vld [vmem:[#allocation8 + $0x60] sm:$0xff]  ;;  %v335_v6 = vld [vmem:[#allocation8 + $0x58] sm:$0xff] }
  0x9e   :  { %417 = vmatpush.msra.mxu2 %v336_v5  ;;  %347 = vmatpush.msrb.mxu0 %v336_v5 }
  0x9f   :  { %138 = vadd.xlane.f32.xlu0 %v662_v7 }
  0xa0   :  { %418 = vmatpush.msra.mxu2 %v335_v6  ;;  %348 = vmatpush.msrb.mxu0 %v335_v6 }
  0xa2   :  { %419 = vmatpush.msra.mxu2 %v334_v11  ;;  %349 = vmatpush.msrb.mxu0 %v334_v11 }
  0xa7   :  { %136 = vadd.xlane.f32.xlu0 %v665_v8 }
 0x112   :  { %v139_v13 = vpop.xlane.xlu0 %138 }
 0x113   :  { %v141_v14 = vmul.f32 0.03125, %v139_v13 }
 0x115   :  { %v143_v15 = vsub.f32 %v662_v7, %v141_v14 }
 0x117   :  { %v669_v16 = vsel %vm146_vm1, %v143_v15, 0.0  ;;  %v333_v15 = vld [vmem:[#allocation8 + $0x48] sm:$0xff] }
 0x118   :  { %v150_v17 = vmul.f32 %v669_v16, %v669_v16  ;;  %420 = vmatpush.msra.mxu2 %v333_v15  ;;  %350 = vmatpush.msrb.mxu0 %v333_v15 }
 0x11a   :  { %153 = vadd.xlane.f32.xlu1 %v150_v17  ;;  %v137_v18 = vpop.xlane.xlu0 %136 }
 0x11b   :  { %v140_v19 = vmul.f32 0.03125, %v137_v18  ;;  %v332_v18 = vld [vmem:[#allocation8 + $0x40] sm:$0xff] }
 0x11c   :  { %421 = vmatpush.msra.mxu2 %v332_v18  ;;  %351 = vmatpush.msrb.mxu0 %v332_v18 }
 0x11d   :  { %v142_v20 = vsub.f32 %v665_v8, %v140_v19 }
 0x11f   :  { %v674_v21 = vsel %vm146_vm1, %v142_v20, 0.0 }
 0x120   :  { %v149_v22 = vmul.f32 %v674_v21, %v674_v21 }
 0x122   :  { %151 = vadd.xlane.f32.xlu1 %v149_v22 }
 0x18d   :  { %v154_v37 = vpop.xlane.xlu1 %153 }
 0x18e   :  { %v156_v38 = vmul.f32 0.03125, %v154_v37 }
 0x190   :  { %v158_v39 = vadd.f32 1e-05, %v156_v38  ;;  %v327_v38 = vld [vmem:[#allocation8 + $0x18] sm:$0xff] }
 0x192   :  { %442 = vrsqrt.f32 %v158_v39  ;;  %vm175_vm3 = vweird.f32 %v158_v39 }
 0x195   :  { %v152_v40 = vpop.xlane.xlu1 %151 }
 0x196   :  { %v155_v41 = vmul.f32 0.03125, %v152_v40  ;;  %v326_v40 = vld [vmem:[#allocation8 + $0x10] sm:$0xff] }
 0x198   :  { %v443_v42 = vpop.eup %442  ;;  %v157_v43 = vadd.f32 1e-05, %v155_v41 }
 0x199   :  { %v170_v44 = vmul.f32 %v443_v42, %v158_v39  ;;  %vm176_vm2 = vweird.f32 %v443_v42 }
 0x19a   :  { %444 = vrsqrt.f32 %v157_v43  ;;  %vm177_vm4 = vmor %vm175_vm3, %vm176_vm2  ;;  %vm165_vm6 = vweird.f32 %v157_v43 }
 0x19b   :  { %v171_v45 = vmul.f32 %v443_v42, %v170_v44  ;;  %v325_v44 = vld [vmem:[#allocation8 + $0x8] sm:$0xff] }
 0x19d   :  { %v172_v46 = vmul.f32 0.5, %v171_v45 }
 0x19f   :  { %v173_v47 = vsub.f32 1.5, %v172_v46 }
 0x1a0   :  { %v445_v48 = vpop.eup %444 }
 0x1a1   :  { %v174_v49 = vmul.f32 %v443_v42, %v173_v47  ;;  %v160_v50 = vmul.f32 %v445_v48, %v157_v43  ;;  %vm166_vm5 = vweird.f32 %v445_v48 }
 0x1a2   :  { %vm167_vm7 = vmor %vm165_vm6, %vm166_vm5 }
 0x1a3   :  { %v161_v52 = vmul.f32 %v445_v48, %v160_v50  ;;  %v178_v53 = vsel %vm177_vm4, %v443_v42, %v174_v49 }
 0x1a4   :  { %v180_v54 = vmul.f32 %v178_v53, %v669_v16 }
 0x1a5   :  { %v162_v56 = vmul.f32 0.5, %v161_v52 }
 0x1a6   :  { %v186_v57 = vmul.f32 %v438_v51, %v180_v54 }
 0x1a7   :  { %v163_v58 = vsub.f32 1.5, %v162_v56 }
 0x1a8   :  { %v192_v59 = vadd.f32 %v439_v55, %v186_v57 }
 0x1a9   :  { %v164_v60 = vmul.f32 %v445_v48, %v163_v58 }
 0x1aa   :  { %232 = vmatmul.f32.vlgmr.msra.gmra.mxu3 %v192_v59 }
 0x1ab   :  { %v168_v61 = vsel %vm167_vm7, %v445_v48, %v164_v60  ;;  %v324_v48 = vld [vmem:[#allocation8] sm:$0xff] }
 0x1ac   :  { %v179_v62 = vmul.f32 %v168_v61, %v674_v21  ;;  %v331_v21 = vld [vmem:[#allocation8 + $0x38] sm:$0xff] }
 0x1ad   :  { %422 = vmatpush.msra.mxu2 %v331_v21  ;;  %352 = vmatpush.msrb.mxu0 %v331_v21 }
 0x1ae   :  { %v185_v63 = vmul.f32 %v438_v51, %v179_v62 }
 0x1af   :  { %423 = vmatpush.msra.mxu2 %v330_v24  ;;  %353 = vmatpush.msrb.mxu0 %v330_v24 }
 0x1b0   :  { %v191_v0 = vadd.f32 %v439_v55, %v185_v63 }
 0x1b1   :  { %424 = vmatpush.msra.mxu2 %v329_v29  ;;  %354 = vmatpush.msrb.mxu0 %v329_v29 }
 0x1b2   :  { %229 = vmatmul.f32.vlgmr.msra.gmra.mxu1 %v191_v0 }
 0x1b3   :  { %425 = vmatpush.msra.mxu2 %v328_v34  ;;  %355 = vmatpush.msrb.mxu0 %v328_v34 }
 0x1b5   :  { %426 = vmatpush.msra.mxu2 %v327_v38  ;;  %356 = vmatpush.msrb.mxu0 %v327_v38 }
 0x1b7   :  { %427 = vmatpush.msra.mxu2 %v326_v40  ;;  %357 = vmatpush.msrb.mxu0 %v326_v40 }
 0x1b9   :  { %428 = vmatpush.msra.mxu2 %v325_v44  ;;  %358 = vmatpush.msrb.mxu0 %v325_v44 }
 0x1bb   :  { %429 = vmatpush.msra.mxu2 %v324_v48  ;;  %359 = vmatpush.msrb.mxu0 %v324_v48 }
 0x22d   :  { %v233_v9 = vpop.f32.mrf.mxu3 }
 0x22e   :  { %v689_v10 = vadd.f32 %v440_v4, %v233_v9 }
 0x22f   :  { %v230_v12 = vpop.f32.mrf.mxu1 }
 0x230   :  { %v692_v13 = vmul.f32 0.70710677, %v689_v10  ;;  %v694_v14 = vadd.f32 %v440_v4, %v230_v12  ;;  %v237_v38 = vmul.f32 0.5, %v689_v10 }
 0x232   :  { %v280_v16 = vmul.f32 %v692_v13, %v692_v13  ;;  %v699_v17 = vmul.f32 0.70710677, %v694_v14  ;;  %v236_v40 = vmul.f32 0.5, %v694_v14 }
 0x234   :  { %v701_v19 = vmin.f32 %v280_v16, 16.0  ;;  %v240_v20 = vmul.f32 %v699_v17, %v699_v17 }
 0x236   :  { %v282_v22 = vmul.f32 2.1237322e-06, %v701_v19  ;;  %v706_v23 = vmin.f32 %v240_v20, 16.0  ;;  %v293_v25 = vmul.f32 3.8918573e-05, %v701_v19 }
 0x238   :  { %v283_v26 = vadd.f32 0.00028619796, %v282_v22  ;;  %v242_v27 = vmul.f32 2.1237322e-06, %v706_v23  ;;  %v253_v28 = vmul.f32 3.8918573e-05, %v706_v23 }
 0x239   :  { %v294_v30 = vadd.f32 0.001143296, %v293_v25 }
 0x23a   :  { %v284_v31 = vmul.f32 %v283_v26, %v701_v19  ;;  %v243_v32 = vadd.f32 0.00028619796, %v242_v27  ;;  %v254_v33 = vadd.f32 0.001143296, %v253_v28 }
 0x23b   :  { %v295_v35 = vmul.f32 %v294_v30, %v701_v19 }
 0x23c   :  { %v244_v36 = vmul.f32 %v243_v32, %v706_v23  ;;  %v255_v37 = vmul.f32 %v254_v33, %v706_v23  ;;  %v285_v39 = vadd.f32 0.0036580483, %v284_v31 }
 0x23d   :  { %v296_v41 = vadd.f32 0.014752088, %v295_v35 }
 0x23e   :  { %v256_v42 = vadd.f32 0.014752088, %v255_v37  ;;  %v245_v43 = vadd.f32 0.0036580483, %v244_v36  ;;  %v286_v47 = vmul.f32 %v285_v39, %v701_v19 }
 0x23f   :  { %v297_v45 = vmul.f32 %v296_v41, %v701_v19 }
 0x240   :  { %v257_v46 = vmul.f32 %v256_v42, %v706_v23  ;;  %v246_v51 = vmul.f32 %v245_v43, %v706_v23  ;;  %v287_v54 = vadd.f32 0.05243302, %v286_v47 }
 0x241   :  { %v298_v49 = vadd.f32 0.112945676, %v297_v45 }
 0x242   :  { %v258_v50 = vadd.f32 0.112945676, %v257_v46  ;;  %v247_v57 = vadd.f32 0.05243302, %v246_v51  ;;  %v288_v60 = vmul.f32 %v287_v54, %v701_v19 }
 0x243   :  { %v299_v52 = vmul.f32 %v298_v49, %v701_v19 }
 0x244   :  { %v259_v53 = vmul.f32 %v258_v50, %v706_v23  ;;  %v248_v63 = vmul.f32 %v247_v57, %v706_v23  ;;  %v289_v0 = vadd.f32 0.18741608, %v288_v60 }
 0x245   :  { %v300_v55 = vadd.f32 0.4994258, %v299_v52 }
 0x246   :  { %v260_v56 = vadd.f32 0.4994258, %v259_v53  ;;  %v249_v1 = vadd.f32 0.18741608, %v248_v63  ;;  %v290_v3 = vmul.f32 %v289_v0, %v701_v19 }
 0x247   :  { %v301_v58 = vmul.f32 %v300_v55, %v701_v19 }
 0x248   :  { %v261_v59 = vmul.f32 %v260_v56, %v706_v23  ;;  %v250_v6 = vmul.f32 %v249_v1, %v706_v23  ;;  %v291_v12 = vadd.f32 1.1283791, %v290_v3 }
 0x249   :  { %v302_v61 = vadd.f32 1.0, %v301_v58 }
 0x24a   :  { %v262_v62 = vadd.f32 1.0, %v261_v59  ;;  %v251_v22 = vadd.f32 1.1283791, %v250_v6  ;;  %v292_v23 = vmul.f32 %v291_v12, %v692_v13 }
 0x24b   :  { %446 = vrcp.f32 %v302_v61  ;;  %v314_v16 = vand.u32 2147483648, %v302_v61  ;;  %v312_v21 = vand.u32 2147483647, %v302_v61  ;;  %vm308_vm10 = vweird.f32 %v302_v61 }
 0x24c   :  { %448 = vrcp.f32 %v262_v62  ;;  %v274_v18 = vand.u32 2147483648, %v262_v62  ;;  %v272_v25 = vand.u32 2147483647, %v262_v62  ;;  %vm268_vm11 = vweird.f32 %v262_v62 }
 0x24d   :  { %v315_v27 = vor.u32 1.1754944e-38, %v314_v16  ;;  %vm313_vm14 = vcmp.eq.f32.partialorder %v312_v21, 8.507059e+37  ;;  %v252_v30 = vmul.f32 %v251_v22, %v699_v17  ;;  %v441_v17 = vld [vmem:[%s750_s8] ss:$0 sm:$0xff] }
 0x24e   :  { %v275_v28 = vor.u32 1.1754944e-38, %v274_v18  ;;  %vm273_vm15 = vcmp.eq.f32.partialorder %v272_v25, 8.507059e+37 }
 0x251   :  { %v447_v2 = vpop.eup %446 }
 0x252   :  { %v449_v4 = vpop.eup %448  ;;  %v304_v5 = vmul.f32 %v447_v2, %v302_v61  ;;  %vm309_vm8 = vweird.f32 %v447_v2 }
 0x253   :  { %v264_v9 = vmul.f32 %v449_v4, %v262_v62  ;;  %vm269_vm9 = vweird.f32 %v449_v4  ;;  %vm310_vm12 = vmor %vm308_vm10, %vm309_vm8 }
 0x254   :  { %v305_v11 = vsub.f32 1.0, %v304_v5  ;;  %vm270_vm13 = vmor %vm268_vm11, %vm269_vm9 }
 0x255   :  { %v265_v15 = vsub.f32 1.0, %v264_v9 }
 0x256   :  { %v306_v20 = vmul.f32 %v447_v2, %v305_v11 }
 0x257   :  { %v266_v24 = vmul.f32 %v449_v4, %v265_v15 }
 0x258   :  { %v307_v26 = vadd.f32 %v447_v2, %v306_v20 }
 0x259   :  { %v267_v19 = vadd.f32 %v449_v4, %v266_v24 }
 0x25a   :  { %v311_v29 = vsel %vm310_vm12, %v447_v2, %v307_v26 }
 0x25b   :  { %v271_v31 = vsel %vm270_vm13, %v449_v4, %v267_v19  ;;  %v316_v32 = vsel %vm313_vm14, %v315_v27, %v311_v29 }
 0x25c   :  { %v276_v33 = vsel %vm273_vm15, %v275_v28, %v271_v31  ;;  %v317_v34 = vmul.f32 %v316_v32, %v292_v23 }
 0x25d   :  { %v277_v35 = vmul.f32 %v276_v33, %v252_v30 }
 0x25e   :  { %v397_v36 = vclamps-f32 %v317_v34, 1.0 }
 0x25f   :  { %v396_v37 = vclamps-f32 %v277_v35, 1.0 }
 0x260   :  { %v321_v39 = vadd.f32 1.0, %v397_v36 }
 0x261   :  { %v320_v13 = vadd.f32 1.0, %v396_v37 }
 0x262   :  { %v323_v41 = vmul.f32 %v321_v39, %v237_v38 }
 0x263   :  { %v322_v42 = vmul.f32 %v320_v13, %v236_v40 }
 0x264   :  { %363 = vmatmul.f32.vlgmr.msra.gmra.mxu2 %v323_v41 }
 0x265   :  { %360 = vmatmul.f32.vlgmr.msrb.gmra.mxu0 %v322_v42 }
 0x2e2   :  { %v361_v43 = vpop.f32.mrf.mxu0 }
 0x2e3   :  { %v362_v44 = vadd.f32 %v441_v17, %v361_v43 }
 0x2e5   :  { %v369_v45 = vadd.f32 %v362_v44, %v665_v8 }
 0x2e7   :  { %371 = vst [vmem:[#allocation10] sm:$0xff] %v369_v45  ;;  %v364_v46 = vpop.f32.mrf.mxu2 }
 0x2e8   :  { %v365_v10 = vadd.f32 %v441_v17, %v364_v46 }
 0x2ea   :  { %v370_v14 = vadd.f32 %v365_v10, %v662_v7 }
 0x2ec   :  { %372 = vst [vmem:[#allocation10 + $0x8] sm:$0xff] %v370_v14 }
 0x2ed   :  { %385 = dma.vmem_to_hbm [thread:$0]  %s378_s13, 256, %s380_s16, [#allocation4], %s579_s17, %s579_s17, %s580_s18  }
 0x2ee   :  { %576 = dma.done.wait [#allocation4], 256  }
 0x2ef   :  { %577 = vsyncadd [#allocation4], 4294967040 }
 0x2f0   :  { %390 = vsyncpa [#allocation3], 1 }
 0x2f1   :  { %391 = vsyncpa [#allocation6], 1 }
 0x2f2   :  { %392 = vsyncpa [#allocation9], 1 }
 0x2f3   :  { %393 = vsyncpa [#allocation4], 1 }

</bundles_post_ra>
